<compile_context>
chip_gen: v6e
topology: v6e:2x2x1
jax: 0.10.0
libtpu: 0.0.40
codegen_flags: <defaults>
</compile_context>

<pallas_src>
import jax
import jax.numpy as jnp
from jax.experimental import pallas as pl
from jax.experimental.pallas import tpu as pltpu


# ---------------------------------------------------------------------------
# helpers
# ---------------------------------------------------------------------------
def _round_up(x, m):
    return ((x + m - 1) // m) * m


def _cdiv(a, b):
    return (a + b - 1) // b


def _sublane(dtype):
    # second-to-last-dim tiling granularity per dtype width
    return {4: 8, 2: 16, 1: 32}.get(jnp.dtype(dtype).itemsize, 8)


def _vmem_budget_and_limit():
    """Generation-aware VMEM budget (bytes) + explicit compiler limit."""
    cap = None
    get_info = getattr(pltpu, "get_tpu_info", None)
    if get_info is not None:
        try:
            cap = getattr(get_info(), "vmem_capacity_bytes", None)
        except Exception:
            cap = None
    if not cap:
        cap = 64 * 1024 * 1024            # conservative fallback (v7x physical)
    limit = int(min(cap - (2 << 20), int(cap * 0.9)))
    budget = int(limit * 0.8)             # headroom for compiler scratch
    return budget, limit


# ---------------------------------------------------------------------------
# matmul path kernels
# ---------------------------------------------------------------------------
def _embed_matmul_kernel(x_ref, w_ref, o_ref):
    # x_ref: (TM, V)  one-hot / soft rows ; w_ref: (V, TD) ; o_ref: (TM, TD)
    o_ref[...] = jnp.dot(
        x_ref[...], w_ref[...], preferred_element_type=jnp.float32
    ).astype(o_ref.dtype)


def _embed_matmul_acc_kernel(x_ref, w_ref, o_ref, acc_ref):
    # Vocab-tiled variant: k (contraction) is always the LAST grid axis.
    k = pl.program_id(2)

    @pl.when(k == 0)
    def _():
        acc_ref[...] = jnp.zeros_like(acc_ref)

    acc_ref[...] += jnp.dot(
        x_ref[...], w_ref[...], preferred_element_type=jnp.float32
    )

    @pl.when(k == pl.num_programs(2) - 1)
    def _():
        o_ref[...] = acc_ref[...].astype(o_ref.dtype)


def one_hot_to_embedding(one_hot, weight, *, tile_m=1024, tile_d=None,
                         tile_k=None):
    """F.linear(one_hot, weight.T) == one_hot @ weight.

    one_hot: (..., V) float (hard one-hot or soft attribution scores).
    weight : (V, D) embedding table.
    Returns (..., D) in result_type(one_hot, weight) — exact F.linear numerics
    (f32 MXU accumulation, no input down-casts).
    """
    V, D = weight.shape
    assert one_hot.shape[-1] == V, "last dim of input must equal vocab_size"
    lead = one_hot.shape[:-1]
    out_dtype = jnp.result_type(one_hot.dtype, weight.dtype)

    M = 1
    for s in lead:
        M *= int(s)
    x2d = one_hot.reshape(M, V)           # reshape only — no pad / cast of x

    bx = jnp.dtype(x2d.dtype).itemsize
    bw = jnp.dtype(weight.dtype).itemsize
    bo = jnp.dtype(out_dtype).itemsize
    sub_m = max(_sublane(x2d.dtype), _sublane(out_dtype))

    budget, vmem_limit = _vmem_budget_and_limit()

    def footprint(tm, td, tk, acc):
        fp = 2 * (tm * tk * bx + tk * td * bw + tm * td * bo)  # double-buffered
        if acc:
            fp += tm * td * 4
        return fp

    def clamp_tm():
        tm = min(_round_up(int(tile_m), sub_m), _round_up(M, sub_m))
        # >=2 M-steps so v7x's two TensorCores both get work (harmless on 1 TC)
        if M > sub_m and _cdiv(M, tm) < 2:
            tm = _round_up(_cdiv(M, 2), sub_m)
        return tm

    # ---- vocab (contraction) tiling: only when full-V tiles cannot fit VMEM
    # even at the smallest useful (tm, td), or when forced via tile_k. --------
    floor_td = min(D, 128)
    if tile_k is not None:
        tk = min(_round_up(int(tile_k), 128), V)
    else:
        tk = V
        if footprint(sub_m, floor_td, V, False) > budget:
            tk = 128
            while 2 * tk < V and footprint(sub_m, floor_td, 2 * tk, True) <= budget:
                tk *= 2
            tk = _round_up(_cdiv(V, _cdiv(V, tk)), 128)  # balance the K blocks
    k_tiled = tk < V

    # ---- M / D tiling: prefer keeping the whole D axis resident so the
    # weight table is read from HBM exactly once. -----------------------------
    tm = clamp_tm()
    if tile_d is not None and _round_up(int(tile_d), 128) < D:
        td = _round_up(int(tile_d), 128)
    else:
        td = D                             # full-D residency attempt
        while footprint(tm, td, tk, k_tiled) > budget and tm > sub_m:
            tm = _round_up(max(tm // 2, sub_m), sub_m)
        if footprint(tm, td, tk, k_tiled) > budget:
            tm = clamp_tm()
            td = 128
            while 2 * td < D and footprint(tm, 2 * td, tk, k_tiled) <= budget:
                td *= 2
    while footprint(tm, td, tk, k_tiled) > budget and tm > sub_m:
        tm = _round_up(max(tm // 2, sub_m), sub_m)

    grid_m = _cdiv(M, tm)
    grid_d = _cdiv(D, td)

    # Choose which of the (M, D) grid axes is innermost: the outer-varying
    # operand's block is revisited (DMA elided), the other is re-streamed once
    # per outer step.  Re-stream whichever costs fewer bytes.
    x_bytes = M * V * bx
    w_bytes = V * D * bw
    swap_ij = (grid_d - 1) * x_bytes < (grid_m - 1) * w_bytes

    w_in = weight
    if k_tiled:
        grid_k = _cdiv(V, tk)
        v_pad = grid_k * tk
        if v_pad != V:
            # Contraction axis must be exact once V is split across grid steps.
            # Only happens for forced / huge-vocab K-tiling with a non-dividing
            # tile; everywhere else x is never touched in the wrapper.
            x2d = jnp.pad(x2d, ((0, 0), (0, v_pad - V)))
            w_in = jnp.pad(weight, ((0, v_pad - V), (0, 0)))
        if swap_ij:
            grid = (grid_d, grid_m, grid_k)
            x_map = lambda j, i, k: (i, k)
            w_map = lambda j, i, k: (k, j)
            o_map = lambda j, i, k: (i, j)
        else:
            grid = (grid_m, grid_d, grid_k)
            x_map = lambda i, j, k: (i, k)
            w_map = lambda i, j, k: (k, j)
            o_map = lambda i, j, k: (i, j)
        kernel = _embed_matmul_acc_kernel
        scratch = [pltpu.VMEM((tm, td), jnp.float32)]
        dims = ("parallel", "parallel", "arbitrary")
    else:
        if swap_ij:
            grid = (grid_d, grid_m)
            x_map = lambda j, i: (i, 0)
            w_map = lambda j, i: (0, j)
            o_map = lambda j, i: (i, j)
        else:
            grid = (grid_m, grid_d)
            x_map = lambda i, j: (i, 0)
            w_map = lambda i, j: (0, j)
            o_map = lambda i, j: (i, j)
        kernel = _embed_matmul_kernel
        scratch = []
        dims = ("parallel", "parallel")

    out = pl.pallas_call(
        kernel,
        out_shape=jax.ShapeDtypeStruct((M, D), out_dtype),
        grid_spec=pltpu.PrefetchScalarGridSpec(
            num_scalar_prefetch=0,
            grid=grid,
            in_specs=[
                pl.BlockSpec((tm, tk), x_map),
                pl.BlockSpec((tk, td), w_map),
            ],
            out_specs=pl.BlockSpec((tm, td), o_map),
            scratch_shapes=scratch,
        ),
        compiler_params=pltpu.CompilerParams(
            dimension_semantics=dims,
            vmem_limit_bytes=vmem_limit,
        ),
    )(x2d, w_in)

    return out.reshape(*lead, D)


# ---------------------------------------------------------------------------
# hard one-hot fast path: scalar-prefetch row gather
# ---------------------------------------------------------------------------
def _embed_gather_kernel(ids_ref, w_row_ref, o_ref):
    # ids_ref (SMEM) is consumed by the weight index_map; the body just copies
    # the gathered row into the output slab.
    del ids_ref
    o_ref[...] = w_row_ref[...].reshape(o_ref.shape)


def embedding_gather(token_ids, weight):
    """rows = weight[token_ids] — equivalent to the matmul path on hard
    one-hots but reads only O(M*D) bytes instead of streaming (M, V)."""
    V, D = weight.shape
    lead = token_ids.shape
    M = 1
    for s in lead:
        M *= int(s)
    ids = token_ids.reshape(M).astype(jnp.int32)

    out = pl.pallas_call(
        _embed_gather_kernel,
        out_shape=jax.ShapeDtypeStruct((M, 1, D), weight.dtype),
        grid_spec=pltpu.PrefetchScalarGridSpec(
            num_scalar_prefetch=1,          # token ids land in SMEM
            grid=(M,),
            in_specs=[
                # Row gather: index_map returns an *element* offset (the token
                # id) along the vocab axis of the table.
                pl.BlockSpec((pl.Element(1), D),
                             lambda i, ids_ref: (ids_ref[i], 0)),
            ],
            out_specs=pl.BlockSpec((1, 1, D), lambda i, ids_ref: (i, 0, 0)),
        ),
        compiler_params=pltpu.CompilerParams(
            dimension_semantics=("arbitrary",),
        ),
    )(ids, weight)
    # TODO(synk): for very long sequences, gather a block of rows per grid step
    # with a manual make_async_copy loop instead of one row per step.
    return out.reshape(*lead, D)


# ---------------------------------------------------------------------------
if __name__ == "__main__":
    B, S, V, D = 2, 8, 32, 64
    key = jax.random.PRNGKey(0)
    k_w, k_idx, k_soft, k_w2, k_idx2 = jax.random.split(key, 5)

    # nn.Embedding-style table (default init ~ N(0, 1))
    weight = jax.random.normal(k_w, (V, D), dtype=jnp.float32)
    idx = jax.random.randint(k_idx, (B, S), 0, V)
    one_hot = jax.nn.one_hot(idx, V, dtype=jnp.float32)            # (B, S, V)
    ref = weight[idx]                                              # (B, S, D)

    # 1) General matmul path (exact F.linear semantics).
    out = jax.block_until_ready(one_hot_to_embedding(one_hot, weight))
    assert out.shape == (B, S, D)
    assert jnp.allclose(out, ref, atol=1e-5, rtol=1e-5)

    # 2) Soft "one-hot" (attribution-style) input with ragged M (111 rows, not
    #    a tile multiple) — exercises the masked boundary block (no jnp.pad).
    soft = jax.nn.softmax(
        jax.random.normal(k_soft, (3, 37, V), dtype=jnp.float32), axis=-1)
    out2 = jax.block_until_ready(one_hot_to_embedding(soft, weight))
    ref2 = jnp.einsum("bsv,vd->bsd", soft, weight)
    assert out2.shape == (3, 37, D)
    assert jnp.allclose(out2, ref2, atol=1e-4, rtol=1e-4)

    # 3) Vocab-tiled f32-accumulator path (forced small tile_k).
    V2, D2 = 384, 256
    w2 = jax.random.normal(k_w2, (V2, D2), dtype=jnp.float32)
    idx2 = jax.random.randint(k_idx2, (2, 5), 0, V2)
    oh2 = jax.nn.one_hot(idx2, V2, dtype=jnp.float32)
    out3 = jax.block_until_ready(one_hot_to_embedding(oh2, w2, tile_k=128))
    assert out3.shape == (2, 5, D2)
    assert jnp.allclose(out3, w2[idx2], atol=1e-5, rtol=1e-5)

    # 4) Hard one-hot fast path (scalar-prefetch row gather).
    out4 = jax.block_until_ready(embedding_gather(idx, weight))
    assert out4.shape == (B, S, D)
    assert jnp.array_equal(out4, ref)

    print("KERNEL_OK")
</pallas_src>

<mosaic_0001>
module attributes {stable_mosaic.version = 11 : i64} {
  func.func @_embed_matmul_kernel(%arg0: i32, %arg1: i32, %arg2: memref<8x32xf32, #tpu.memory_space<vmem>>, %arg3: memref<32x64xf32, #tpu.memory_space<vmem>>, %arg4: memref<8x64xf32, #tpu.memory_space<vmem>>) attributes {dimension_semantics = [#tpu.dimension_semantics<parallel>, #tpu.dimension_semantics<parallel>], iteration_bounds = array<i64: 1, 2>, scalar_prefetch = 0 : i64, scratch_operands = 0 : i64, tpu.core_type = #tpu.core_type<tc>, window_params = [{transform_indices = @transform_0, window_bounds = array<i64: 8, 32>}, {transform_indices = @transform_1, window_bounds = array<i64: 32, 64>}, {transform_indices = @transform_2, window_bounds = array<i64: 8, 64>}]} {
    %c0 = arith.constant 0 : index
    %c0_0 = arith.constant 0 : index
    %0 = vector.load %arg2[%c0, %c0_0] : memref<8x32xf32, #tpu.memory_space<vmem>>, vector<8x32xf32>
    %c0_1 = arith.constant 0 : index
    %c0_2 = arith.constant 0 : index
    %1 = vector.load %arg3[%c0_1, %c0_2] : memref<32x64xf32, #tpu.memory_space<vmem>>, vector<32x64xf32>
    %cst = arith.constant dense<0.000000e+00> : vector<8x64xf32>
    %2 = tpu.matmul %0, %1, %cst {dimension_numbers = #tpu.dot_dimension_numbers<[1], [0], [0], [1], [0, 0, 1, 1], [], []>} : vector<8x32xf32>, vector<32x64xf32>, vector<8x64xf32> -> vector<8x64xf32>
    %c0_3 = arith.constant 0 : index
    %c0_4 = arith.constant 0 : index
    %3 = vector.load %arg4[%c0_3, %c0_4] : memref<8x64xf32, #tpu.memory_space<vmem>>, vector<8x64xf32>
    tpu.vector_store %arg4[%c0_3, %c0_4], %2 {strides = array<i32>} : memref<8x64xf32, #tpu.memory_space<vmem>>, vector<8x64xf32>,
    return
  }
  func.func @transform_0(%arg0: i32, %arg1: i32) -> (i32, i32) {
    %c0_i32 = arith.constant 0 : i32
    %c0_i32_0 = arith.constant 0 : i32
    return %arg1, %c0_i32 : i32, i32
  }
  func.func @transform_1(%arg0: i32, %arg1: i32) -> (i32, i32) {
    %c0_i32 = arith.constant 0 : i32
    %c0_i32_0 = arith.constant 0 : i32
    return %c0_i32, %arg0 : i32, i32
  }
  func.func @transform_2(%arg0: i32, %arg1: i32) -> (i32, i32) {
    %c0_i32 = arith.constant 0 : i32
    return %arg1, %arg0 : i32, i32
  }
}

</mosaic_0001>

<bundles_post_ra>
// kernel: tpu_custom_call.1
= control target key start
LH: loop header
LB: loop body
LE: loop exit
PB: predicated region body
PF: predicated region fallthrough
CT: control target
= control target key end

     0   :  { %7 = vsyncpa [#allocation3], 0  ;;  %s832_s0 = inlined_call_operand.hbm [shape: f32[16,32], index: 0, kind: input, shape index: {}]   ;;  %s833_s1 = inlined_call_operand.hbm [shape: f32[32,64], index: 1, kind: input, shape index: {}]   ;;  %s834_s2 = inlined_call_operand.hbm [shape: f32[16,64], index: 2, kind: output, shape index: {}]  }
   0x1   :  { %9 = vsyncpa [#allocation3 + $0x1], 0 }
   0x2   :  { %10 = vsyncpa [#allocation6], 0 }
   0x3   :  { %11 = vsyncpa [#allocation4], 0 }
   0x4   :  { %13 = vsyncpa [#allocation4 + $0x1], 0  ;;  %s653_s9 = smov 0   ;;  %s655_s10 = smov 0  }
   0x5   :  { %s657_s11 = smov 0   ;;  %s659_s12 = smov 0  }
   0x6   :  { %s661_s13 = smov 0   ;;  %s663_s14 = smov 0  }
   0x7 LB: > { %s382_s15 = sadd.s32 4294967295, %s629_s14   ;;  %s383_s16 = sadd.s32 4294967294, %s629_s14   ;;  %s629_s14 = sphi %s663_s14, %s19_s14   ;;  %s625_s13 = sphi %s661_s13, %s852_s13   ;;  %s621_s12 = sphi %s659_s12, %s851_s12   ;;  %s617_s11 = sphi %s657_s11, %s850_s11   ;;  %s613_s10 = sphi %s655_s10, %s849_s10   ;;  %s609_s9 = sphi %s653_s9, %s848_s9  }
   0x8   : > { %p51_p0 = scmp.ne.s32.totalorder %s613_s10, %s609_s9  ;;  %p687_p1 = scmp.eq.s32.totalorder %s382_s15, 0 }
   0x9   : > { %p691_p2 = scmp.eq.s32.totalorder %s382_s15, 1  ;;  %p109_p3 = scmp.eq.s32.totalorder %s383_s16, 1 }
   0xa   : > { %p697_p4 = por %p687_p1, %p51_p0  ;;  %p384_p5 = scmp.ge.s32.totalorder %s629_s14, 1 }
   0xb   : > { %p702_p6 = por %p109_p3, %p51_p0  ;;  %p116_p7 = scmp.lt.s32.totalorder %s629_s14, 3 }
   0xc   : > { %s838_s19 = scalar_select %p697_p4, 1, 0 }
   0xd   : > { %s839_s20 = scalar_select %p702_p6, 1, 0 }
   0xe   : > { %p707_p8 = pnand %p384_p5, %p116_p7  ;;  %s631_s22 = smov [#allocation5]  }
   0xf   : > { %s130_s23 = sshll.u32 %s631_s22, 4  ;;  %s28_s25 = sadd.s32 1, %s625_s13  ;;  %s131_s23 = int_to_ptr.vmem [resolvable:$true] %s130_s23 }
  0x10   : > { %p422_p9 = pneg %p707_p8  ;;  %s502_s26 = scalar_lea.vmem %s131_s23, 512 }
  0x11   : > { %p503_p13 = scmp.ne.s32.totalorder %s131_s23, %s502_s26  ;;  %p510_p5 = scmp.lt.s32.totalorder %s131_s23, %s131_s23 }
  0x12   : > { %p716_p11 = pnand %p422_p9, %p687_p1  ;;  %p511_p7 = scmp.lt.s32.totalorder %s502_s26, %s502_s26 }
  0x14   : > { %p493_p12 = pneg %p716_p11  ;;  %p512_p6 = por %p511_p7, %p510_p5 }
  0x16   : > { %p505_p0 = pnand %p503_p13, %p493_p12 }
  0x18   : > { %p506_p3 = pneg %p505_p0 }
  0x1a   : > { %p513_p4 = pnand %p512_p6, %p506_p3 }
  0x1c   : > { %516 = shalt.err (!%p513_p4)
}
  0x1d   : > { %s632_s27 = smov 128   ;;  %s633_s28 = smov 8  }
  0x1e   : > { %425 = dma.hbm_to_vmem [thread:$0]  (!%p716_p11), %s833_s1, 512, %s131_s23, [#allocation6], %s632_s27, %s632_s27, %s633_s28  }
  0x1f   : > { %p29_p6 = scmp.ge.s32.totalorder %s28_s25, 2  ;;  %s38_s3 = sadd.s32 1, %s617_s11 }
  0x20   : > { %p45_p4 = scmp.ne.s32.totalorder %s617_s11, %s613_s10  ;;  %p46_p9 = scmp.eq.s32.totalorder %s629_s14, 0 }
  0x21   : > { %s854_s25 = smov (%p29_p6, %s28_s25), 0  ;;  %p435_p0 = scmp.lt.s32.totalorder %s629_s14, 2 }
  0x22   : > { %p734_p12 = por %p46_p9, %p45_p4  ;;  %p740_p13 = por %p691_p2, %p45_p4 }
  0x23   : > { %s35_s6 = ssub.s32 %s625_s13, %s854_s25  ;;  %s144_s7 = sand.u32 1, %s617_s11  }
  0x24   : > { %p36_p11 = scmp.eq.s32.totalorder %s35_s6, 0  ;;  %s387_s8 = sshll.u32 %s144_s7, 3 }
  0x25   : > { %s388_s16 = sshll.u32 %s625_s13, 7  ;;  %s148_s26 = scalar_lea.vmem [#allocation2], %s387_s8 }
  0x26   : > { %s749_s15 = scalar_select %p36_p11, %s617_s11, %s38_s3  }
  0x27   : > { %s153_s24 = scalar_lea.hbm %s832_s0, %s388_s16  ;;  %s155_s27 = sshll.u32 %s148_s26, 4  ;;  %s156_s27 = int_to_ptr.vmem [resolvable:$true] %s155_s27 }
  0x28   : > { %p757_p2 = pnand %p435_p0, %p734_p12  ;;  %s145_s28 = scalar_lea.sflag [#allocation3], %s144_s7 }
  0x29   : > { %s530_s29 = scalar_lea.vmem %s156_s27, 128  ;;  %s634_s30 = smov [#allocation2]  }
  0x2a   : > { %p519_p3 = pneg %p757_p2  ;;  %p531_p5 = scmp.ne.s32.totalorder %s156_s27, %s530_s29 }
  0x2b   : > { %s535_s3 = sshll.u32 %s634_s30, 4  ;;  %s536_s3 = int_to_ptr.vmem [resolvable:$false] %s535_s3 }
  0x2c   : > { %p533_p7 = pnand %p531_p5, %p519_p3  ;;  %s537_s6 = scalar_lea.vmem %s536_s3, 256 }
  0x2d   : > { %p538_p4 = scmp.lt.s32.totalorder %s156_s27, %s536_s3  ;;  %p539_p9 = scmp.lt.s32.totalorder %s537_s6, %s530_s29 }
  0x2e   : > { %p534_p6 = pneg %p533_p7 }
  0x2f   : > { %p540_p11 = por %p539_p9, %p538_p4 }
  0x31   : > { %p541_p10 = pnand %p540_p11, %p534_p6 }
  0x33   : > { %544 = shalt.err (!%p541_p10)
}
  0x34   : > { %429 = dma.hbm_to_vmem [thread:$0]  (!%p757_p2), %s153_s24, 128, %s156_s27, %s145_s28  }
  0x35   : > { %164 = sbr.rel (%p707_p8) target bundleno = 277 (0x115), region = 28  ;;  %s768_s4 = sand.u32 (!%p707_p8), 1, %s613_s10  }
  0x36   : > { %s390_s7 = sshll.u32 (!%p707_p8), %s768_s4, 3  ;;  %s167_s8 = scalar_lea.sflag (!%p707_p8), [#allocation3], %s768_s4 }
  0x37   : > { %s170_s16 = scalar_lea.vmem (!%p707_p8), [#allocation2], %s390_s7  ;;  %p845_p12 = scmp.ne.s32.totalorder (!%p707_p8), %s838_s19, 0 }
  0x3a   : > { %596 = dma.done.wait (%p845_p12), %s167_s8, 128  }
  0x3b   : > { %598 = vsyncadd (%p845_p12), %s167_s8, 4294967168 }
  0x3c   : > { %600 = dma.done.wait (%p687_p1), [#allocation6], 512  }
  0x3d   : > { %602 = vsyncadd (%p687_p1), [#allocation6], 4294966784  ;;  %v635_v0 = vmov 0.0   ;;  %vm636_vm0 = vmmov 0   ;;  %v199_v1 = vld [vmem:[#allocation5 + $0x18] sm:$0xff]  ;;  %v198_v2 = vld [vmem:[#allocation5 + $0x10] sm:$0xff] }
  0x3e   : > { %403 = vmatprep.subr.mxu0 %v635_v0  ;;  %411 = vmatprep.mubr.msk.f32.mxu0 %vm636_vm0, %v635_v0  ;;  %v197_v3 = vld [vmem:[#allocation5 + $0x8] sm:$0xff]  ;;  %v196_v4 = vld [vmem:[#allocation5] sm:$0xff]  ;;  %v195_v5 = vld [vmem:[%s170_s16] sm:$0xff]  ;;  %vm200_vm1 = vcmask 261120   ;;  %s395_s17 = sshll.u32 %s621_s12, 7  ;;  %s194_s19 = scalar_lea.vmem [#allocation7], %s390_s7 }
  0x3f   : > { %404 = vmatpush3.msra.mxu0 %v199_v1  ;;  %s291_s21 = sshll.u32 %s194_s19, 4  ;;  %vm274_vm2 = vcmask 523264   ;;  %s784_s24 = scalar_lea.hbm %s834_s2, %s395_s17  ;;  %s786_s21 = int_to_ptr.vmem [resolvable:$true] %s291_s21 }
  0x40   : > { %405 = vmatprep.subr.mxu0 %v635_v0  ;;  %s277_s26 = scalar_lea.sflag [#allocation4], %s768_s4  ;;  %s545_s27 = scalar_lea.vmem %s786_s21, 128 }
  0x41   : > { %406 = vmatpush3.msra.mxu0 %v198_v2  ;;  %p546_p1 = scmp.ne.s32.totalorder %s786_s21, %s545_s27  ;;  %s637_s12 = smov [#allocation7]  }
  0x42   : > { %407 = vmatprep.subr.mxu0 %v635_v0  ;;  %s549_s18 = sshll.u32 %s637_s12, 4  ;;  %s550_s18 = int_to_ptr.vmem [resolvable:$false] %s549_s18 }
  0x43   : > { %408 = vmatpush3.msra.mxu0 %v197_v3  ;;  %p547_p8 = pnand %p546_p1, %p740_p13  ;;  %s551_s28 = scalar_lea.vmem %s550_s18, 256 }
  0x44   : > { %409 = vmatprep.subr.mxu0 %v635_v0  ;;  %p552_p0 = scmp.lt.s32.totalorder %s786_s21, %s550_s18  ;;  %p553_p2 = scmp.lt.s32.totalorder %s551_s28, %s545_s27 }
  0x45   : > { %410 = vmatpush3.msra.mxu0 %v196_v4  ;;  %p548_p10 = pneg %p547_p8 }
  0x46   : > { %412 = vmatmul.mubr.msk.f32.vlgmr.msra.gmra.mxu0 %vm200_vm1, %v195_v5  ;;  %p554_p3 = por %p553_p2, %p552_p0 }
  0x48   : > { %p555_p5 = pnand %p554_p3, %p548_p10 }
 0x106   : > { %v270_v6 = vpop.f32.mrf.mxu0 }
 0x107   : > { %275 = vst.msk [vmem:[%s194_s19] sm:$0xff] %vm274_vm2, %v270_v6 }
 0x108   : > { %v413_v7 = vpop.f32.mrf.mxu0 }
 0x109   : > { %558 = shalt.err (!%p555_p5)
}
 0x10a   : > { %s559_s29 = scalar_lea.hbm %s784_s24, 128  ;;  %s563_s6 = scalar_lea.hbm %s834_s2, 256 }
 0x10b   : > { %p560_p7 = scmp.ne.s32.totalorder %s784_s24, %s559_s29  ;;  %p564_p9 = scmp.lt.s32.totalorder %s784_s24, %s834_s2 }
 0x10c   : > { %p565_p11 = scmp.lt.s32.totalorder %s563_s6, %s559_s29 }
 0x10d   : > { %p561_p6 = pnand %p560_p7, %p740_p13 }
 0x10e   : > { %p566_p12 = por %p565_p11, %p564_p9 }
 0x10f   : > { %p562_p4 = pneg %p561_p6 }
 0x111   : > { %p567_p1 = pnand %p566_p12, %p562_p4 }
 0x113   : > { %570 = shalt.err (!%p567_p1)
}
 0x114   : > { %420 = dma.vmem_to_hbm [thread:$0]  (%p740_p13), %s786_s21, 128, %s784_s24, %s277_s26  }
 0x115 PF: > { %s303_s8 = sand.u32 1, %s609_s9   ;;  %p846_p8 = scmp.ne.s32.totalorder %s839_s20, 0 }
 0x116   : > { %p847_p10 = scmp.ge.s32.totalorder %s629_s14, 2  ;;  %s304_s16 = scalar_lea.sflag [#allocation4], %s303_s8 }
 0x118   : > { %p431_p0 = pnand %p847_p10, %p846_p8 }
 0x11a   : > { %p432_p2 = pneg %p431_p0 }
 0x11c   : > { %604 = dma.done.wait (%p432_p2), %s304_s16, 128  }
 0x11d   : > { %606 = vsyncadd (%p432_p2), %s304_s16, 4294967168  ;;  %s19_s14 = sadd.s32 1, %s629_s14   ;;  %s848_s9 = smov %s613_s10 }
 0x11e   : > { %p16_p3 = scmp.ge.s32.totalorder %s19_s14, 4   ;;  %s849_s10 = smov %s617_s11 }
 0x11f   : > { %s850_s11 = smov %s749_s15  ;;  %s851_s12 = smov %s625_s13 }
 0x120   : > { %s852_s13 = smov %s854_s25  ;;  %18 = sbr.rel (!%p16_p3) target bundleno = 7 (0x7), region = 78 }
 0x125   :  { %309 = vsyncpa [#allocation3], 1 }
 0x126   :  { %311 = vsyncpa [#allocation3 + $0x1], 1 }
 0x127   :  { %312 = vsyncpa [#allocation6], 1 }
 0x128   :  { %313 = vsyncpa [#allocation4], 1 }
 0x129   :  { %315 = vsyncpa [#allocation4 + $0x1], 1 }

</bundles_post_ra>
